<compile_context>
chip_gen: v7x
topology: tpu7x:2x2x1
jax: 0.10.0
libtpu: 0.0.40
codegen_flags: <defaults>
</compile_context>

<pallas_src>
import jax
import jax.numpy as jnp
from jax.experimental import pallas as pl
from jax.experimental.pallas import tpu as pltpu


def _round_up(x: int, m: int) -> int:
    return ((x + m - 1) // m) * m


def _linear_scoring_kernel(emb_ref, tgt_ref, out_ref):
    # emb_ref: (TB, TJ, L)   tgt_ref: (TB, L)   out_ref: (TB, TJ)
    emb = emb_ref[...]                               # keep input dtype (bf16 ok on v6e/v7x)
    tgt = tgt_ref[...]
    prod = emb * tgt[:, None, :]                     # VPU elementwise, (TB, TJ, L)
    acc = jnp.sum(prod, axis=-1, dtype=jnp.float32)  # f32 accumulate, (TB, TJ)
    out_ref[...] = acc.astype(out_ref.dtype)         # lane-dense store (TJ % 128 == 0)


def linear_scoring(target, expansion_embeddings, *, tile_j=512, tile_b=8):
    """out[b, j] = sum_l expansion_embeddings[b, j, l] * target[b, l]."""
    B, J, L = expansion_embeddings.shape
    assert target.shape == (B, L), (target.shape, (B, L))
    out_dtype = jnp.result_type(expansion_embeddings.dtype, target.dtype)

    # Lane-dense J tiles: multiple of 128, capped at tile_j.
    TJ = min(tile_j, _round_up(J, 128))
    J_pad = _round_up(J, TJ)

    # Batch tiling only when it keeps the (8,128) sublane rule trivially
    # satisfied (TB multiple of 8); otherwise keep the full batch per block.
    if B % 8 == 0 and B > tile_b:
        TB = tile_b
    else:
        TB = B

    emb = expansion_embeddings
    if J_pad != J:
        emb = jnp.pad(emb, ((0, 0), (0, J_pad - J), (0, 0)))

    grid = (B // TB, J_pad // TJ)

    itemsize = jnp.dtype(emb.dtype).itemsize
    cost = pl.CostEstimate(
        flops=2 * B * J_pad * L,
        transcendentals=0,
        bytes_accessed=(B * J_pad * L + B * L) * itemsize
        + B * J_pad * jnp.dtype(out_dtype).itemsize,
    )

    out = pl.pallas_call(
        _linear_scoring_kernel,
        out_shape=jax.ShapeDtypeStruct((B, J_pad), out_dtype),
        grid_spec=pltpu.PrefetchScalarGridSpec(
            num_scalar_prefetch=0,
            grid=grid,
            in_specs=[
                # emb: streamed (TB, TJ, L) tiles; last two dims satisfy the
                # (8, 128) rule (TJ % 128 == 0 or full, L is full extent).
                pl.BlockSpec((TB, TJ, L), lambda bt, jt: (bt, jt, 0)),
                # target: (TB, L); index_map ignores jt -> DMA'd once per
                # batch tile, reused across all J tiles.
                pl.BlockSpec((TB, L), lambda bt, jt: (bt, 0)),
            ],
            out_specs=pl.BlockSpec((TB, TJ), lambda bt, jt: (bt, jt)),
        ),
        compiler_params=pltpu.CompilerParams(
            dimension_semantics=("parallel", "parallel"),
        ),
        cost_estimate=cost,
    )(emb, target)

    if J_pad != J:
        out = out[:, :J]
    return out


def init_linear_params(key, input_size, output_size, dtype=jnp.float32):
    # nn.Linear(input_size, output_size) parameters: declared by the module
    # but never used by forward(); materialized only for shape fidelity.
    kw, kb = jax.random.split(key)
    bound = 1.0 / jnp.sqrt(jnp.asarray(input_size, dtype))
    weight = jax.random.uniform(kw, (output_size, input_size), dtype, -bound, bound)
    bias = jax.random.uniform(kb, (output_size,), dtype, -bound, bound)
    return weight, bias


if __name__ == "__main__":
    key = jax.random.PRNGKey(0)
    k_t, k_e, k_p, k_t2, k_e2 = jax.random.split(key, 5)

    # Small shapes implied by the module: batch=2, num-expansions=8, hidden=32.
    B, J, L = 2, 8, 32
    output_size = 8

    # Unused-by-forward linear params (module-shape fidelity only).
    # TODO(synk): self.linear is never applied in forward(); nothing to fuse.
    _w, _b = init_linear_params(k_p, input_size=L, output_size=output_size)

    target = jax.random.normal(k_t, (B, L), dtype=jnp.float32)
    expansion_embeddings = jax.random.normal(k_e, (B, J, L), dtype=jnp.float32)

    out = jax.block_until_ready(linear_scoring(target, expansion_embeddings))
    ref = jnp.einsum('ijl,il->ij', expansion_embeddings, target,
                     precision=jax.lax.Precision.HIGHEST)
    assert out.shape == (B, J)
    assert jnp.allclose(out, ref, atol=1e-5, rtol=1e-5)

    # Second check exercising the multi-tile (batch, J) grid path.
    B2, J2, L2 = 16, 1024, 128
    target2 = jax.random.normal(k_t2, (B2, L2), dtype=jnp.float32)
    emb2 = jax.random.normal(k_e2, (B2, J2, L2), dtype=jnp.float32)
    out2 = jax.block_until_ready(linear_scoring(target2, emb2))
    ref2 = jnp.einsum('ijl,il->ij', emb2, target2,
                      precision=jax.lax.Precision.HIGHEST)
    assert out2.shape == (B2, J2)
    assert jnp.allclose(out2, ref2, atol=1e-4, rtol=1e-4)

    print("KERNEL_OK")
</pallas_src>

<mosaic_0001>
module attributes {stable_mosaic.version = 11 : i64} {
  func.func @_linear_scoring_kernel(%arg0: i32, %arg1: i32, %arg2: memref<2x128x32xf32, #tpu.memory_space<vmem>>, %arg3: memref<2x32xf32, #tpu.memory_space<vmem>>, %arg4: memref<2x128xf32, #tpu.memory_space<vmem>>) attributes {dimension_semantics = [#tpu.dimension_semantics<parallel>, #tpu.dimension_semantics<parallel>], iteration_bounds = array<i64: 1, 1>, scalar_prefetch = 0 : i64, scratch_operands = 0 : i64, tpu.core_type = #tpu.core_type<tc>, window_params = [{transform_indices = @transform_0, window_bounds = array<i64: 2, 128, 32>}, {transform_indices = @transform_1, window_bounds = array<i64: 2, 32>}, {transform_indices = @transform_2, window_bounds = array<i64: 2, 128>}]} {
    %c0 = arith.constant 0 : index
    %c0_0 = arith.constant 0 : index
    %c0_1 = arith.constant 0 : index
    %0 = vector.load %arg2[%c0, %c0_0, %c0_1] : memref<2x128x32xf32, #tpu.memory_space<vmem>>, vector<2x128x32xf32>
    %c0_2 = arith.constant 0 : index
    %c0_3 = arith.constant 0 : index
    %1 = vector.load %arg3[%c0_2, %c0_3] : memref<2x32xf32, #tpu.memory_space<vmem>>, vector<2x32xf32>
    %2 = vector.shape_cast %1 : vector<2x32xf32> to vector<2x1x32xf32>
    %3 = vector.broadcast %2 : vector<2x1x32xf32> to vector<2x128x32xf32>
    %4 = arith.mulf %0, %3 : vector<2x128x32xf32>
    %cst = arith.constant dense<0.000000e+00> : vector<2x128xf32>
    %5 = vector.multi_reduction <add>, %4, %cst [2] : vector<2x128x32xf32> to vector<2x128xf32>
    %c0_4 = arith.constant 0 : index
    %c0_5 = arith.constant 0 : index
    %6 = vector.load %arg4[%c0_4, %c0_5] : memref<2x128xf32, #tpu.memory_space<vmem>>, vector<2x128xf32>
    tpu.vector_store %arg4[%c0_4, %c0_5], %5 {strides = array<i32>} : memref<2x128xf32, #tpu.memory_space<vmem>>, vector<2x128xf32>,
    return
  }
  func.func @transform_0(%arg0: i32, %arg1: i32) -> (i32, i32, i32) {
    %c0_i32 = arith.constant 0 : i32
    %c0_i32_0 = arith.constant 0 : i32
    return %arg0, %arg1, %c0_i32 : i32, i32, i32
  }
  func.func @transform_1(%arg0: i32, %arg1: i32) -> (i32, i32) {
    %c0_i32 = arith.constant 0 : i32
    %c0_i32_0 = arith.constant 0 : i32
    return %arg0, %c0_i32 : i32, i32
  }
  func.func @transform_2(%arg0: i32, %arg1: i32) -> (i32, i32) {
    %c0_i32 = arith.constant 0 : i32
    return %arg0, %arg1 : i32, i32
  }
}

</mosaic_0001>

<bundles_post_ra>
// kernel: tpu_custom_call.1
= control target key start
LH: loop header
LB: loop body
LE: loop exit
PB: predicated region body
PF: predicated region fallthrough
CT: control target
= control target key end

     0   :  { %v57_v0 = vlaneseq  ;;  %v474_v2 = vmov 1966171168   ;;  %vm110_vm0 = vcmask 261120   ;;  %s822_s0 = inlined_call_operand.vmem [shape: f32[2,128,32], index: 0, kind: input, shape index: {}]   ;;  %s823_s1 = inlined_call_operand.vmem [shape: f32[2,32], index: 1, kind: input, shape index: {}]   ;;  %s824_s2 = inlined_call_operand.hbm [shape: f32[2,128], index: 2, kind: output, shape index: {}]  }
   0x1   :  { %v447_v1 = vld.sshfl [vmem:[%s823_s1] sm:$0x11 pattern:$0x75316420]  ;;  %v55_v3 = vunpack.c.l.s4 %v474_v2  ;;  %v29_v13 = vld [vmem:[%s822_s0 + $0x88] sm:$0xff] }
   0x2   :  { %v495_v4 = vshrl.u32 %v57_v0, 7  ;;  %v53_v5 = vcombine.high %v447_v1, %v447_v1  ;;  %v28_v9 = vld [vmem:[%s822_s0 + $0x80] sm:$0xff]  ;;  %v13_v14 = vld [vmem:[%s822_s0 + $0x8] sm:$0xff] }
   0x3   :  { %v56_v6 = vunpack.c.0.s8 %v55_v3  ;;  %v12_v12 = vld [vmem:[%s822_s0] sm:$0xff] }
   0x4   :  { %v70_v8 = vsub.s32 0, %v495_v4 }
   0x5   :  { %v59_v7 = vsub.s32 %v56_v6, %v495_v4 }
   0x7   :  { %v67_v10 = vrot.slane %v53_v5, %v59_v7  ;;  %v60_v11 = vrot.slane %v447_v1, %v59_v7 }
   0x9   :  { %v511_v15 = vrot.slane %v67_v10, %v70_v8  ;;  %v513_v16 = vrot.slane %v60_v11, %v70_v8 }
   0xa   :  { %7 = vsyncpa [#allocation3], 0  ;;  %v30_v21 = vld [vmem:[%s822_s0 + $0x90] sm:$0xff]  ;;  %v31_v29 = vld [vmem:[%s822_s0 + $0x98] sm:$0xff]  ;;  %vm250_vm1 = vcmask 130112   ;;  %vm257_vm2 = vcmask 195712  }
   0xb   :  { %v94_v17 = vmul.f32 %v511_v15, %v28_v9  ;;  %v78_v18 = vmul.f32 %v513_v16, %v12_v12  ;;  %v95_v19 = vmul.f32 %v511_v15, %v29_v13  ;;  %v79_v20 = vmul.f32 %v513_v16, %v13_v14  ;;  %v14_v22 = vld [vmem:[%s822_s0 + $0x10] sm:$0xff]  ;;  %v15_v30 = vld [vmem:[%s822_s0 + $0x18] sm:$0xff]  ;;  %v32_v35 = vld [vmem:[%s822_s0 + $0xa0] sm:$0xff] }
   0xc   :  { %v96_v27 = vmul.f32 %v511_v15, %v30_v21  ;;  %v80_v28 = vmul.f32 %v513_v16, %v14_v22  ;;  %v97_v33 = vmul.f32 %v511_v15, %v31_v29  ;;  %v81_v34 = vmul.f32 %v513_v16, %v15_v30  ;;  %v16_v36 = vld [vmem:[%s822_s0 + $0x20] sm:$0xff]  ;;  %v33_v41 = vld [vmem:[%s822_s0 + $0xa8] sm:$0xff]  ;;  %v34_v47 = vld [vmem:[%s822_s0 + $0xb0] sm:$0xff] }
   0xd   :  { %v159_v23 = vsel %vm110_vm0, %v94_v17, 0.0  ;;  %v111_v24 = vsel %vm110_vm0, %v78_v18, 0.0  ;;  %v162_v25 = vsel %vm110_vm0, %v95_v19, 0.0  ;;  %v114_v26 = vsel %vm110_vm0, %v79_v20, 0.0  ;;  %v17_v42 = vld [vmem:[%s822_s0 + $0x28] sm:$0xff]  ;;  %v18_v48 = vld [vmem:[%s822_s0 + $0x30] sm:$0xff] }
   0xe   :  { %160 = vadd.xlane.f32.xlu1 %v159_v23  ;;  %112 = vadd.xlane.f32.xlu0 %v111_v24  ;;  %v165_v31 = vsel %vm110_vm0, %v96_v27, 0.0  ;;  %v117_v32 = vsel %vm110_vm0, %v80_v28, 0.0  ;;  %v168_v37 = vsel %vm110_vm0, %v97_v33, 0.0  ;;  %v120_v38 = vsel %vm110_vm0, %v81_v34, 0.0  ;;  %v35_v53 = vld [vmem:[%s822_s0 + $0xb8] sm:$0xff]  ;;  %v36_v59 = vld [vmem:[%s822_s0 + $0xc0] sm:$0xff] }
   0xf   :  { %v98_v39 = vmul.f32 %v511_v15, %v32_v35  ;;  %v82_v40 = vmul.f32 %v513_v16, %v16_v36  ;;  %v99_v45 = vmul.f32 %v511_v15, %v33_v41  ;;  %v83_v46 = vmul.f32 %v513_v16, %v17_v42  ;;  %v19_v54 = vld [vmem:[%s822_s0 + $0x38] sm:$0xff]  ;;  %v20_v60 = vld [vmem:[%s822_s0 + $0x40] sm:$0xff]  ;;  %v37_v2 = vld [vmem:[%s822_s0 + $0xc8] sm:$0xff] }
  0x10   :  { %v100_v51 = vmul.f32 %v511_v15, %v34_v47  ;;  %v84_v52 = vmul.f32 %v513_v16, %v18_v48  ;;  %v101_v57 = vmul.f32 %v511_v15, %v35_v53  ;;  %v85_v58 = vmul.f32 %v513_v16, %v19_v54  ;;  %v21_v3 = vld [vmem:[%s822_s0 + $0x48] sm:$0xff]  ;;  %v38_v9 = vld [vmem:[%s822_s0 + $0xd0] sm:$0xff]  ;;  %v39_v17 = vld [vmem:[%s822_s0 + $0xd8] sm:$0xff] }
  0x11   :  { %v171_v43 = vsel %vm110_vm0, %v98_v39, 0.0  ;;  %v123_v44 = vsel %vm110_vm0, %v82_v40, 0.0  ;;  %v174_v49 = vsel %vm110_vm0, %v99_v45, 0.0  ;;  %v126_v50 = vsel %vm110_vm0, %v83_v46, 0.0  ;;  %v22_v10 = vld [vmem:[%s822_s0 + $0x50] sm:$0xff]  ;;  %v23_v18 = vld [vmem:[%s822_s0 + $0x58] sm:$0xff] }
  0x12   :  { %163 = vadd.xlane.f32.xlu1 %v162_v25  ;;  %115 = vadd.xlane.f32.xlu0 %v114_v26  ;;  %v177_v55 = vsel %vm110_vm0, %v100_v51, 0.0  ;;  %v129_v56 = vsel %vm110_vm0, %v84_v52, 0.0  ;;  %v180_v61 = vsel %vm110_vm0, %v101_v57, 0.0  ;;  %v132_v62 = vsel %vm110_vm0, %v85_v58, 0.0  ;;  %v40_v23 = vld [vmem:[%s822_s0 + $0xe0] sm:$0xff]  ;;  %v41_v29 = vld [vmem:[%s822_s0 + $0xe8] sm:$0xff] }
  0x13   :  { %v102_v63 = vmul.f32 %v511_v15, %v36_v59  ;;  %v86_v1 = vmul.f32 %v513_v16, %v20_v60  ;;  %v103_v7 = vmul.f32 %v511_v15, %v37_v2  ;;  %v87_v8 = vmul.f32 %v513_v16, %v21_v3  ;;  %v24_v24 = vld [vmem:[%s822_s0 + $0x60] sm:$0xff]  ;;  %v25_v30 = vld [vmem:[%s822_s0 + $0x68] sm:$0xff]  ;;  %v42_v35 = vld [vmem:[%s822_s0 + $0xf0] sm:$0xff] }
  0x14   :  { %v104_v13 = vmul.f32 %v511_v15, %v38_v9  ;;  %v88_v14 = vmul.f32 %v513_v16, %v22_v10  ;;  %v105_v21 = vmul.f32 %v511_v15, %v39_v17  ;;  %v89_v22 = vmul.f32 %v513_v16, %v23_v18  ;;  %v26_v36 = vld [vmem:[%s822_s0 + $0x70] sm:$0xff]  ;;  %v43_v41 = vld [vmem:[%s822_s0 + $0xf8] sm:$0xff] }
  0x15   :  { %v183_v5 = vsel %vm110_vm0, %v102_v63, 0.0  ;;  %v135_v6 = vsel %vm110_vm0, %v86_v1, 0.0  ;;  %v186_v11 = vsel %vm110_vm0, %v103_v7, 0.0  ;;  %v138_v12 = vsel %vm110_vm0, %v87_v8, 0.0  ;;  %v27_v42 = vld [vmem:[%s822_s0 + $0x78] sm:$0xff]  ;;  %s475_s0 = smov [#allocation2]  }
  0x16   :  { %166 = vadd.xlane.f32.xlu1 %v165_v31  ;;  %118 = vadd.xlane.f32.xlu0 %v117_v32  ;;  %v189_v19 = vsel %vm110_vm0, %v104_v13, 0.0  ;;  %v141_v20 = vsel %vm110_vm0, %v88_v14, 0.0  ;;  %v192_v25 = vsel %vm110_vm0, %v105_v21, 0.0  ;;  %v144_v26 = vsel %vm110_vm0, %v89_v22, 0.0  ;;  %s439_s16 = sshll.u32 %s475_s0, 4  ;;  %s440_s16 = int_to_ptr.vmem [resolvable:$true] %s439_s16 }
  0x17   :  { %v106_v27 = vmul.f32 %v511_v15, %v40_v23  ;;  %v90_v28 = vmul.f32 %v513_v16, %v24_v24  ;;  %v107_v33 = vmul.f32 %v511_v15, %v41_v29  ;;  %v91_v34 = vmul.f32 %v513_v16, %v25_v30  ;;  %s450_s17 = scalar_lea.vmem %s440_s16, 32  ;;  %p455_p1 = scmp.lt.s32.totalorder %s440_s16, %s440_s16 }
  0x18   :  { %v108_v39 = vmul.f32 %v511_v15, %v42_v35  ;;  %v92_v40 = vmul.f32 %v513_v16, %v26_v36  ;;  %v109_v45 = vmul.f32 %v511_v15, %v43_v41  ;;  %v93_v46 = vmul.f32 %v513_v16, %v27_v42  ;;  %p451_p0 = scmp.ne.s32.totalorder %s440_s16, %s450_s17  ;;  %p456_p2 = scmp.lt.s32.totalorder %s450_s17, %s450_s17 }
  0x19   :  { %v195_v31 = vsel %vm110_vm0, %v106_v27, 0.0  ;;  %v147_v32 = vsel %vm110_vm0, %v90_v28, 0.0  ;;  %v240_v2 = vand.u32 127, %v57_v0  ;;  %vm264_vm3 = vcmask 261312  }
  0x1a   :  { %169 = vadd.xlane.f32.xlu1 %v168_v37  ;;  %121 = vadd.xlane.f32.xlu0 %v120_v38  ;;  %v198_v37 = vsel %vm110_vm0, %v107_v33, 0.0  ;;  %v150_v38 = vsel %vm110_vm0, %v91_v34, 0.0  ;;  %v204_v47 = vsel %vm110_vm0, %v109_v45, 0.0  ;;  %v156_v48 = vsel %vm110_vm0, %v93_v46, 0.0  ;;  %p457_p3 = por %p456_p2, %p455_p1 }
  0x1b   :  { %v245_v3 = vadd.s32 4294967288, %v240_v2  ;;  %v266_v9 = vadd.s32 4294967264, %v240_v2  ;;  %v243_v10 = vsub.s32 %v240_v2, %v495_v4  ;;  %v280_v14 = vadd.s32 4294967248, %v240_v2 }
  0x1c   :  { %v287_v17 = vadd.s32 4294967240, %v240_v2  ;;  %v294_v18 = vadd.s32 4294967232, %v240_v2  ;;  %v308_v23 = vadd.s32 4294967216, %v240_v2  ;;  %v315_v24 = vadd.s32 4294967208, %v240_v2  ;;  %p458_p4 = pnand %p457_p3, %p451_p0 }
  0x1d   :  { %v269_v22 = vsub.s32 %v266_v9, %v495_v4  ;;  %vm271_vm4 = vcmask 326912   ;;  %v329_v27 = vadd.s32 4294967192, %v240_v2  ;;  %vm278_vm5 = vcmask 392512  }
  0x1e   :  { %172 = vadd.xlane.f32.xlu1 %v171_v43  ;;  %124 = vadd.xlane.f32.xlu0 %v123_v44  ;;  %v201_v43 = vsel %vm110_vm0, %v108_v39, 0.0  ;;  %v153_v44 = vsel %vm110_vm0, %v92_v40, 0.0  ;;  %v283_v28 = vsub.s32 %v280_v14, %v495_v4  ;;  %vm285_vm6 = vcmask 458112  }
  0x1f   :  { %v290_v29 = vsub.s32 %v287_v17, %v495_v4  ;;  %vm292_vm7 = vcmask 523712   ;;  %v717_v30 = vsub.s32 %v294_v18, %v495_v4  ;;  %v336_v34 = vadd.s32 4294967184, %v240_v2 }
  0x20   :  { %v343_v35 = vadd.s32 4294967176, %v240_v2  ;;  %vm299_vm8 = vcmask 589312   ;;  %v732_v39 = vsub.s32 %v315_v24, %v495_v4  ;;  %vm306_vm9 = vcmask 654912  }
  0x21   :  { %vm313_vm10 = vcmask 720512   ;;  %vm320_vm11 = vcmask 786112   ;;  %vm327_vm12 = vcmask 851712   ;;  %vm334_vm13 = vcmask 917312  }
  0x22   :  { %175 = vadd.xlane.f32.xlu1 %v174_v49  ;;  %127 = vadd.xlane.f32.xlu0 %v126_v50  ;;  %vm341_vm14 = vcmask 982912   ;;  %vm348_vm15 = vcmask 1048512   ;;  %vm429_vm0 = vcmask 1041409  }
  0x26   :  { %178 = vadd.xlane.f32.xlu1 %v177_v55  ;;  %130 = vadd.xlane.f32.xlu0 %v129_v56 }
  0x2a   :  { %181 = vadd.xlane.f32.xlu1 %v180_v61  ;;  %133 = vadd.xlane.f32.xlu0 %v132_v62 }
  0x2e   :  { %184 = vadd.xlane.f32.xlu1 %v183_v5  ;;  %136 = vadd.xlane.f32.xlu0 %v135_v6  ;;  %v252_v5 = vadd.s32 4294967280, %v240_v2  ;;  %v259_v6 = vadd.s32 4294967272, %v240_v2 }
  0x30   :  { %v255_v13 = vsub.s32 %v252_v5, %v495_v4  ;;  %v262_v0 = vsub.s32 %v259_v6, %v495_v4 }
  0x32   :  { %187 = vadd.xlane.f32.xlu1 %v186_v11  ;;  %139 = vadd.xlane.f32.xlu0 %v138_v12  ;;  %v273_v11 = vadd.s32 4294967256, %v240_v2  ;;  %v248_v12 = vsub.s32 %v245_v3, %v495_v4 }
  0x36   :  { %190 = vadd.xlane.f32.xlu1 %v189_v19  ;;  %142 = vadd.xlane.f32.xlu0 %v141_v20  ;;  %v301_v19 = vadd.s32 4294967224, %v240_v2 }
  0x3a   :  { %193 = vadd.xlane.f32.xlu1 %v192_v25  ;;  %145 = vadd.xlane.f32.xlu0 %v144_v26  ;;  %v276_v25 = vsub.s32 %v273_v11, %v495_v4  ;;  %v322_v26 = vadd.s32 4294967200, %v240_v2  ;;  %v752_v2 = vsub.s32 %v343_v35, %v495_v4 }
  0x3c   :  { %v737_v42 = vsub.s32 %v322_v26, %v495_v4 }
  0x3e   :  { %196 = vadd.xlane.f32.xlu1 %v195_v31  ;;  %148 = vadd.xlane.f32.xlu0 %v147_v32  ;;  %v720_v31 = vsub.s32 %v301_v19, %v495_v4 }
  0x42   :  { %199 = vadd.xlane.f32.xlu1 %v198_v37  ;;  %151 = vadd.xlane.f32.xlu0 %v150_v38  ;;  %v729_v38 = vsub.s32 %v308_v23, %v495_v4 }
  0x46   :  { %202 = vadd.xlane.f32.xlu1 %v201_v43  ;;  %154 = vadd.xlane.f32.xlu0 %v153_v44  ;;  %v740_v43 = vsub.s32 %v329_v27, %v495_v4 }
  0x4a   :  { %205 = vadd.xlane.f32.xlu1 %v204_v47  ;;  %157 = vadd.xlane.f32.xlu0 %v156_v48 }
  0x9b   :  { %v663_v49 = vpop.xlane.xlu1 %160  ;;  %v665_v50 = vpop.xlane.xlu0 %112 }
  0x9c   :  { %v353_v44 = vrot.slane %v663_v49, %v243_v10  ;;  %v244_v45 = vrot.slane %v665_v50, %v243_v10 }
  0x9f   :  { %v667_v51 = vpop.xlane.xlu1 %163  ;;  %v669_v52 = vpop.xlane.xlu0 %115 }
  0xa0   :  { %v357_v36 = vrot.slane %v667_v51, %v248_v12  ;;  %v249_v37 = vrot.slane %v669_v52, %v248_v12 }
  0xa2   :  { %v358_v49 = vsel %vm250_vm1, %v357_v36, %v353_v44  ;;  %v251_v50 = vsel %vm250_vm1, %v249_v37, %v244_v45 }
  0xa3   :  { %v671_v53 = vpop.xlane.xlu1 %166  ;;  %v673_v15 = vpop.xlane.xlu0 %118 }
  0xa4   :  { %v362_v40 = vrot.slane %v671_v53, %v255_v13  ;;  %v256_v41 = vrot.slane %v673_v15, %v255_v13  ;;  %v749_v15 = vsub.s32 %v336_v34, %v495_v4 }
  0xa7   :  { %v675_v16 = vpop.xlane.xlu1 %169  ;;  %v677_v54 = vpop.xlane.xlu0 %121 }
  0xa8   :  { %v367_v46 = vrot.slane %v675_v16, %v262_v0  ;;  %v263_v47 = vrot.slane %v677_v54, %v262_v0 }
  0xab   :  { %v679_v55 = vpop.xlane.xlu1 %172  ;;  %v681_v56 = vpop.xlane.xlu0 %124 }
  0xac   :  { %v372_v48 = vrot.slane %v679_v55, %v269_v22  ;;  %v270_v51 = vrot.slane %v681_v56, %v269_v22  ;;  %v363_v55 = vsel %vm257_vm2, %v362_v40, %v358_v49  ;;  %v258_v56 = vsel %vm257_vm2, %v256_v41, %v251_v50 }
  0xad   :  { %v368_v4 = vsel %vm264_vm3, %v367_v46, %v363_v55  ;;  %v265_v6 = vsel %vm264_vm3, %v263_v47, %v258_v56 }
  0xae   :  { %v272_v10 = vsel %vm271_vm4, %v270_v51, %v265_v6 }
  0xaf   :  { %v683_v57 = vpop.xlane.xlu1 %175  ;;  %v685_v58 = vpop.xlane.xlu0 %127 }
  0xb0   :  { %v377_v16 = vrot.slane %v683_v57, %v276_v25  ;;  %v277_v54 = vrot.slane %v685_v58, %v276_v25  ;;  %v373_v58 = vsel %vm271_vm4, %v372_v48, %v368_v4 }
  0xb2   :  { %v378_v13 = vsel %vm278_vm5, %v377_v16, %v373_v58  ;;  %v279_v14 = vsel %vm278_vm5, %v277_v54, %v272_v10 }
  0xb3   :  { %v687_v59 = vpop.xlane.xlu1 %178  ;;  %v689_v60 = vpop.xlane.xlu0 %130 }
  0xb4   :  { %v382_v3 = vrot.slane %v687_v59, %v283_v28  ;;  %v284_v5 = vrot.slane %v689_v60, %v283_v28 }
  0xb6   :  { %v383_v17 = vsel %vm285_vm6, %v382_v3, %v378_v13  ;;  %v286_v0 = vsel %vm285_vm6, %v284_v5, %v279_v14 }
  0xb7   :  { %v691_v61 = vpop.xlane.xlu1 %181  ;;  %v693_v62 = vpop.xlane.xlu0 %133 }
  0xb8   :  { %v387_v9 = vrot.slane %v691_v61, %v290_v29  ;;  %v291_v57 = vrot.slane %v693_v62, %v290_v29 }
  0xba   :  { %v388_v18 = vsel %vm292_vm7, %v387_v9, %v383_v17  ;;  %v293_v19 = vsel %vm292_vm7, %v291_v57, %v286_v0 }
  0xbb   :  { %v695_v63 = vpop.xlane.xlu1 %184  ;;  %v697_v1 = vpop.xlane.xlu0 %136 }
  0xbc   :  { %v392_v11 = vrot.slane %v695_v63, %v717_v30  ;;  %v298_v59 = vrot.slane %v697_v1, %v717_v30 }
  0xbe   :  { %v393_v22 = vsel %vm299_vm8, %v392_v11, %v388_v18  ;;  %v300_v23 = vsel %vm299_vm8, %v298_v59, %v293_v19 }
  0xbf   :  { %v700_v7 = vpop.xlane.xlu1 %187  ;;  %v702_v8 = vpop.xlane.xlu0 %139 }
  0xc0   :  { %v397_v61 = vrot.slane %v700_v7, %v720_v31  ;;  %v305_v62 = vrot.slane %v702_v8, %v720_v31 }
  0xc2   :  { %v398_v26 = vsel %vm306_vm9, %v397_v61, %v393_v22  ;;  %v307_v27 = vsel %vm306_vm9, %v305_v62, %v300_v23 }
  0xc3   :  { %v708_v20 = vpop.xlane.xlu1 %190  ;;  %v710_v21 = vpop.xlane.xlu0 %142 }
  0xc4   :  { %v402_v63 = vrot.slane %v708_v20, %v729_v38  ;;  %v312_v1 = vrot.slane %v710_v21, %v729_v38 }
  0xc6   :  { %v403_v30 = vsel %vm313_vm10, %v402_v63, %v398_v26  ;;  %v314_v31 = vsel %vm313_vm10, %v312_v1, %v307_v27 }
  0xc7   :  { %v722_v32 = vpop.xlane.xlu1 %193  ;;  %v724_v33 = vpop.xlane.xlu0 %145 }
  0xc8   :  { %v407_v7 = vrot.slane %v722_v32, %v732_v39  ;;  %v319_v8 = vrot.slane %v724_v33, %v732_v39 }
  0xca   :  { %v408_v34 = vsel %vm320_vm11, %v407_v7, %v403_v30  ;;  %v321_v35 = vsel %vm320_vm11, %v319_v8, %v314_v31 }
  0xcb   :  { %v197_v52 = vpop.xlane.xlu1 %196  ;;  %v149_v53 = vpop.xlane.xlu0 %148 }
  0xcc   :  { %v412_v24 = vrot.slane %v197_v52, %v737_v42  ;;  %v326_v20 = vrot.slane %v149_v53, %v737_v42 }
  0xce   :  { %v413_v36 = vsel %vm327_vm12, %v412_v24, %v408_v34  ;;  %v328_v37 = vsel %vm327_vm12, %v326_v20, %v321_v35 }
  0xcf   :  { %v200_v60 = vpop.xlane.xlu1 %199  ;;  %v152_v12 = vpop.xlane.xlu0 %151 }
  0xd0   :  { %v417_v28 = vrot.slane %v200_v60, %v740_v43  ;;  %v333_v29 = vrot.slane %v152_v12, %v740_v43 }
  0xd2   :  { %v418_v40 = vsel %vm334_vm13, %v417_v28, %v413_v36  ;;  %v335_v41 = vsel %vm334_vm13, %v333_v29, %v328_v37 }
  0xd3   :  { %v203_v25 = vpop.xlane.xlu1 %202  ;;  %v155_v21 = vpop.xlane.xlu0 %154 }
  0xd4   :  { %v422_v32 = vrot.slane %v203_v25, %v749_v15  ;;  %v340_v33 = vrot.slane %v155_v21, %v749_v15 }
  0xd6   :  { %v423_v44 = vsel %vm341_vm14, %v422_v32, %v418_v40  ;;  %v342_v45 = vsel %vm341_vm14, %v340_v33, %v335_v41 }
  0xd7   :  { %v206_v38 = vpop.xlane.xlu1 %205  ;;  %v158_v39 = vpop.xlane.xlu0 %157 }
  0xd8   :  { %v427_v42 = vrot.slane %v206_v38, %v752_v2  ;;  %v347_v43 = vrot.slane %v158_v39, %v752_v2 }
  0xda   :  { %v349_v46 = vsel %vm348_vm15, %v347_v43, %v342_v45  ;;  %v428_v47 = vsel %vm348_vm15, %v427_v42, %v423_v44 }
  0xdb   :  { %v430_v48 = vsel %vm429_vm0, %v428_v47, %v349_v46 }
  0xdc   :  { %432 = vst [vmem:[#allocation2] sm:$0x3] %v430_v48 }
  0xdd   :  { %461 = shalt.err (!%p458_p4)
}
  0xde   :  { %s462_s20 = scalar_lea.hbm %s824_s2, 32 }
  0xdf   :  { %p463_p5 = scmp.ne.s32.totalorder %s824_s2, %s462_s20  ;;  %p466_p6 = scmp.lt.u32.totalorder %s462_s20, %s824_s2 }
  0xe1   :  { %p468_p7 = pnand %p466_p6, %p463_p5 }
  0xe3   :  { %471 = shalt.err (!%p468_p7)
}
  0xe4   :  { %442 = dma.vmem_to_hbm [thread:$0]  %s440_s16, 32, %s824_s2, [#allocation3]  }
  0xe5   :  { %472 = dma.done.wait [#allocation3], 32  }
  0xe6   :  { %473 = vsyncadd [#allocation3], 4294967264 }
  0xe7   :  { %446 = vsyncpa [#allocation3], 1 }

</bundles_post_ra>
